<compile_context>
chip_gen: v7x
topology: tpu7x:2x2x1
jax: 0.10.0
libtpu: 0.0.40
codegen_flags: <defaults>
</compile_context>

<pallas_src>
import jax
import jax.numpy as jnp
from jax import lax
from jax.experimental import pallas as pl
from jax.experimental.pallas import tpu as pltpu

BN_EPS = 5e-5            # module spec: BatchNorm1d(eps=5e-05)
LEAKY_SLOPE = 0.7
SOFTPLUS_THRESHOLD = 20.0
LANE = 128
SUBLANE = 8


def _round_up(v, m):
    return (v + m - 1) // m * m


def _pad2(a, rows, cols):
    r, c = a.shape
    return jnp.pad(a, ((0, rows - r), (0, cols - c)))


def _leaky_relu(z):
    return jnp.where(z >= 0, z, LEAKY_SLOPE * z)


def _softplus(z):
    # Softplus(beta=1, threshold=20): z if z > 20 else log(1 + exp(z))
    safe = jnp.minimum(z, SOFTPLUS_THRESHOLD)
    return jnp.where(z > SOFTPLUS_THRESHOLD, z, jnp.log1p(jnp.exp(safe)))


def _slab_layout(in_dim, mid, n_out):
    """Row offsets of the packed parameter slab (all sublane-aligned)."""
    lane = _round_up(max(mid, n_out, LANE), LANE)
    in_r = _round_up(in_dim, SUBLANE)
    mid_r = _round_up(mid, SUBLANE)
    w2_off = in_r
    w3_off = in_r + mid_r
    sc_off = in_r + 2 * mid_r
    rows = sc_off + SUBLANE
    return lane, w2_off, w3_off, sc_off, rows


def pack_params(p):
    """Pack all weights / BN params into ONE lane-dense (rows, 128) f32 slab.

    Call ONCE at init (parameters are call-invariant); the per-call forward
    consumes the slab directly, so no per-call pad/concat XLA ops remain.
    b1/b2 are intentionally omitted: training-mode BatchNorm subtracts the
    batch mean, so the linear biases cancel exactly.
    """
    in_dim, mid = p["w1"].shape
    n_out = p["w3"].shape[1]
    lane, w2_off, w3_off, sc_off, rows = _slab_layout(in_dim, mid, n_out)
    in_r = w2_off
    mid_r = w3_off - w2_off
    blocks = [
        _pad2(p["w1"].astype(jnp.float32), in_r, lane),
        _pad2(p["w2"].astype(jnp.float32), mid_r, lane),
        _pad2(p["w3"].astype(jnp.float32), mid_r, lane),
        _pad2(p["g1"].astype(jnp.float32), 1, lane),
        _pad2(p["be1"].astype(jnp.float32), 1, lane),
        _pad2(p["g2"].astype(jnp.float32), 1, lane),
        _pad2(p["be2"].astype(jnp.float32), 1, lane),
        _pad2(p["b3"].astype(jnp.float32), 1, lane),
        jnp.zeros((SUBLANE - 5, lane), jnp.float32),
    ]
    slab = jnp.concatenate(blocks, axis=0)
    assert slab.shape == (rows, lane)
    return slab


def _make_kernel(in_dim, mid, true_b, instanced):
    """Fused decoder kernel over the packed parameter slab.

    par_ref rows: [0:in_dim]=W1, [w2_off:+mid]=W2, [w3_off:+mid]=W3,
    [sc_off:+8] = {g1, be1, g2, be2, b3, 0, 0, 0}.
    """
    in_r = _round_up(in_dim, SUBLANE)
    mid_r = _round_up(mid, SUBLANE)
    w2_off = in_r
    w3_off = in_r + mid_r
    sc_off = in_r + 2 * mid_r
    inv_b = 1.0 / float(true_b)

    def body(par_ref, x, x2, x1):
        w1 = par_ref[0:in_dim, :]
        w2 = par_ref[w2_off:w2_off + mid, :]
        w3 = par_ref[w3_off:w3_off + mid, :]
        scal = par_ref[sc_off:sc_off + SUBLANE, :]
        g1, be1 = scal[0:1, 0:mid], scal[1:2, 0:mid]
        g2, be2 = scal[2:3, 0:mid], scal[3:4, 0:mid]
        b3 = scal[4:5, :]

        def bn(h, gamma, beta):
            # Training-mode BatchNorm, two-pass (centered) biased variance,
            # folded into a single per-channel scale/shift.
            mean = jnp.sum(h, axis=0, keepdims=True) * inv_b
            cen = h - mean
            var = jnp.sum(cen * cen, axis=0, keepdims=True) * inv_b
            return cen * (gamma * lax.rsqrt(var + BN_EPS)) + beta

        # layer 1: lin1 (bias cancels in BN) -> BN1 -> +x2 -> LeakyReLU(0.7)
        h1 = jnp.dot(x, w1, preferred_element_type=jnp.float32)
        out1 = _leaky_relu(bn(h1[:, 0:mid], g1, be1) + x2)
        # layer 2: lin2 (bias cancels in BN) -> BN2 -> +x1 -> LeakyReLU(0.7)
        h2 = jnp.dot(out1, w2, preferred_element_type=jnp.float32)
        out2 = _leaky_relu(bn(h2[:, 0:mid], g2, be2) + x1)
        # layer 3: lin3 + b3 -> Softplus(beta=1, threshold=20)
        h3 = jnp.dot(out2, w3, preferred_element_type=jnp.float32) + b3
        return _softplus(h3)

    if instanced:
        def kernel(par_ref, x_ref, x2_ref, x1_ref, o_ref):
            o_ref[0] = body(par_ref, x_ref[0], x2_ref[0], x1_ref[0])
    else:
        def kernel(par_ref, x_ref, x2_ref, x1_ref, o_ref):
            o_ref[...] = body(par_ref, x_ref[...], x2_ref[...], x1_ref[...])
    return kernel


def decoder_forward(x, x2, x1, par, n_out):
    """Single DecoderNet_SkipConn forward as one gridless Pallas call.

    `par` is the pre-packed slab from pack_params() (packed once at init).
    Activations are passed unpadded; the output is lane-dense (B, 128) and
    only the [:, :n_out] column slice remains in the wrapper.
    """
    B, in_dim = x.shape
    mid = x2.shape[1]
    lane = par.shape[1]
    kernel = _make_kernel(in_dim, mid, B, instanced=False)
    vmem = pl.BlockSpec(memory_space=pltpu.MemorySpace.VMEM)
    cost = pl.CostEstimate(
        flops=2 * B * (in_dim + 2 * mid) * lane + 16 * B * mid,
        transcendentals=2 * B * lane,
        bytes_accessed=4 * (x.size + x2.size + x1.size + par.size + B * lane))
    out = pl.pallas_call(
        kernel,
        out_shape=jax.ShapeDtypeStruct((B, lane), jnp.float32),
        in_specs=[vmem, vmem, vmem, vmem],
        out_specs=vmem,
        cost_estimate=cost,
    )(par, x, x2, x1)
    return out[:, :n_out]


def decoder_forward_batched(xs, x2s, x1s, par, n_out):
    """Many independent forwards folded into ONE pallas_call.

    Grid axis = instance (each instance has its own full-batch BN statistics,
    so instances are independent) and is marked "parallel" so Mosaic can
    shard it across both v7x TensorCores. The parameter slab's index_map is
    constant, so it is DMA'd once and stays resident in VMEM across the grid.
    """
    num, B, in_dim = xs.shape
    mid = x2s.shape[2]
    rows, lane = par.shape
    kernel = _make_kernel(in_dim, mid, B, instanced=True)
    cost = pl.CostEstimate(
        flops=num * (2 * B * (in_dim + 2 * mid) * lane + 16 * B * mid),
        transcendentals=num * 2 * B * lane,
        bytes_accessed=4 * (xs.size + x2s.size + x1s.size + par.size
                            + num * B * lane))
    out = pl.pallas_call(
        kernel,
        out_shape=jax.ShapeDtypeStruct((num, B, lane), jnp.float32),
        grid=(num,),
        in_specs=[
            pl.BlockSpec((rows, lane), lambda i: (0, 0)),       # weights: resident
            pl.BlockSpec((1, B, in_dim), lambda i: (i, 0, 0)),
            pl.BlockSpec((1, B, mid), lambda i: (i, 0, 0)),
            pl.BlockSpec((1, B, mid), lambda i: (i, 0, 0)),
        ],
        out_specs=pl.BlockSpec((1, B, lane), lambda i: (i, 0, 0)),
        compiler_params=pltpu.CompilerParams(
            dimension_semantics=("parallel",)),
        cost_estimate=cost,
    )(par, xs, x2s, x1s)
    return out[:, :, :n_out]


def init_params(key, middle_dim, N, in_dim=24):
    """Deterministic synthetic parameters matching the module's shapes.

    Linear weights are stored transposed: (in_features, out_features).
    BatchNorm gamma/beta follow PyTorch init (ones / zeros), stored (1, C).
    b1/b2 exist (as in the PyTorch module) but are not packed for the kernel
    because they cancel under training-mode BatchNorm.
    """
    ks = jax.random.split(key, 6)
    scale1 = 1.0 / jnp.sqrt(in_dim)
    scale2 = 1.0 / jnp.sqrt(middle_dim)
    return {
        "w1": jax.random.uniform(ks[0], (in_dim, middle_dim), jnp.float32, -scale1, scale1),
        "b1": jax.random.uniform(ks[1], (1, middle_dim), jnp.float32, -scale1, scale1),
        "g1": jnp.ones((1, middle_dim), jnp.float32),
        "be1": jnp.zeros((1, middle_dim), jnp.float32),
        "w2": jax.random.uniform(ks[2], (middle_dim, middle_dim), jnp.float32, -scale2, scale2),
        "b2": jax.random.uniform(ks[3], (1, middle_dim), jnp.float32, -scale2, scale2),
        "g2": jnp.ones((1, middle_dim), jnp.float32),
        "be2": jnp.zeros((1, middle_dim), jnp.float32),
        "w3": jax.random.uniform(ks[4], (middle_dim, N), jnp.float32, -scale2, scale2),
        "b3": jax.random.uniform(ks[5], (1, N), jnp.float32, -scale2, scale2),
    }


def reference_forward(x, x2, x1, p):
    """Pure-JAX reference matching the PyTorch module (with biases)."""
    def bn(h, g, b):
        mean = jnp.mean(h, axis=0, keepdims=True)
        var = jnp.mean((h - mean) ** 2, axis=0, keepdims=True)
        return (h - mean) * lax.rsqrt(var + BN_EPS) * g + b

    h1 = x @ p["w1"] + p["b1"]
    out1 = _leaky_relu(bn(h1, p["g1"], p["be1"]) + x2)
    h2 = out1 @ p["w2"] + p["b2"]
    out2 = _leaky_relu(bn(h2, p["g2"], p["be2"]) + x1)
    return _softplus(out2 @ p["w3"] + p["b3"])


# TODO(synk): BatchNorm running_mean/running_var updates (PyTorch train-step
# side effects) are not produced; only the forward output is computed. Also,
# dropping b1/b2 is exact only for training-mode (batch-stat) BatchNorm.

if __name__ == "__main__":
    B = 8            # batch
    IN_DIM = 24      # fixed by the module (lin1: 24 -> middleDim)
    MIDDLE = 32      # middleDim
    N = 78           # default N in the module

    key = jax.random.PRNGKey(0)
    k_p, k_x, k_x2, k_x1 = jax.random.split(key, 4)

    params = init_params(k_p, MIDDLE, N, IN_DIM)
    par = pack_params(params)   # packed ONCE at init (hoisted per feedback)

    x = jax.random.normal(k_x, (B, IN_DIM), jnp.float32)
    x2 = jax.random.normal(k_x2, (B, MIDDLE), jnp.float32)
    x1 = jax.random.normal(k_x1, (B, MIDDLE), jnp.float32)

    fwd = jax.jit(decoder_forward, static_argnames=("n_out",))
    out = jax.block_until_ready(fwd(x, x2, x1, par, n_out=N))

    ref = reference_forward(x, x2, x1, params)
    assert out.shape == (B, N)
    assert jnp.allclose(out, ref, atol=2e-4, rtol=2e-4)

    # Multi-instance path: several independent forwards in one pallas_call
    # (amortizes launch overhead; parallel grid axis -> both v7x TCs).
    NUM = 4
    kb = jax.random.split(jax.random.PRNGKey(1), 3)
    xs = jax.random.normal(kb[0], (NUM, B, IN_DIM), jnp.float32)
    x2s = jax.random.normal(kb[1], (NUM, B, MIDDLE), jnp.float32)
    x1s = jax.random.normal(kb[2], (NUM, B, MIDDLE), jnp.float32)

    fwd_b = jax.jit(decoder_forward_batched, static_argnames=("n_out",))
    outs = jax.block_until_ready(fwd_b(xs, x2s, x1s, par, n_out=N))

    refs = jax.vmap(lambda a, b, c: reference_forward(a, b, c, params))(xs, x2s, x1s)
    assert outs.shape == (NUM, B, N)
    assert jnp.allclose(outs, refs, atol=2e-4, rtol=2e-4)

    print("KERNEL_OK")
</pallas_src>

<mosaic_0001>
module attributes {stable_mosaic.version = 11 : i64} {
  func.func @kernel(%arg0: memref<96x128xf32, #tpu.memory_space<vmem>>, %arg1: memref<8x24xf32, #tpu.memory_space<vmem>>, %arg2: memref<8x32xf32, #tpu.memory_space<vmem>>, %arg3: memref<8x32xf32, #tpu.memory_space<vmem>>, %arg4: memref<8x128xf32, #tpu.memory_space<vmem>>) attributes {dimension_semantics = [], scalar_prefetch = 0 : i64, scratch_operands = 0 : i64, tpu.core_type = #tpu.core_type<tc>} {
    %c0 = arith.constant 0 : index
    %c0_0 = arith.constant 0 : index
    %0 = vector.load %arg1[%c0, %c0_0] : memref<8x24xf32, #tpu.memory_space<vmem>>, vector<8x24xf32>
    %c0_1 = arith.constant 0 : index
    %c0_2 = arith.constant 0 : index
    %1 = vector.load %arg2[%c0_1, %c0_2] : memref<8x32xf32, #tpu.memory_space<vmem>>, vector<8x32xf32>
    %c0_3 = arith.constant 0 : index
    %c0_4 = arith.constant 0 : index
    %2 = vector.load %arg3[%c0_3, %c0_4] : memref<8x32xf32, #tpu.memory_space<vmem>>, vector<8x32xf32>
    %c0_5 = arith.constant 0 : index
    %c0_6 = arith.constant 0 : index
    %3 = vector.load %arg0[%c0_5, %c0_6] : memref<96x128xf32, #tpu.memory_space<vmem>>, vector<24x128xf32>
    %c24 = arith.constant 24 : index
    %c0_7 = arith.constant 0 : index
    %4 = vector.load %arg0[%c24, %c0_7] : memref<96x128xf32, #tpu.memory_space<vmem>>, vector<32x128xf32>
    %c56 = arith.constant 56 : index
    %c0_8 = arith.constant 0 : index
    %5 = vector.load %arg0[%c56, %c0_8] : memref<96x128xf32, #tpu.memory_space<vmem>>, vector<32x128xf32>
    %c88 = arith.constant 88 : index
    %c0_9 = arith.constant 0 : index
    %6 = vector.load %arg0[%c88, %c0_9] : memref<96x128xf32, #tpu.memory_space<vmem>>, vector<8x128xf32>
    %7 = vector.extract_strided_slice %6 {offsets = [0, 0], sizes = [1, 32], strides = [1, 1]} : vector<8x128xf32> to vector<1x32xf32>
    %8 = vector.extract_strided_slice %6 {offsets = [1, 0], sizes = [1, 32], strides = [1, 1]} : vector<8x128xf32> to vector<1x32xf32>
    %9 = vector.extract_strided_slice %6 {offsets = [2, 0], sizes = [1, 32], strides = [1, 1]} : vector<8x128xf32> to vector<1x32xf32>
    %10 = vector.extract_strided_slice %6 {offsets = [3, 0], sizes = [1, 32], strides = [1, 1]} : vector<8x128xf32> to vector<1x32xf32>
    %11 = vector.extract_strided_slice %6 {offsets = [4, 0], sizes = [1, 128], strides = [1, 1]} : vector<8x128xf32> to vector<1x128xf32>
    %cst = arith.constant dense<0.000000e+00> : vector<8x128xf32>
    %12 = tpu.matmul %0, %3, %cst {dimension_numbers = #tpu.dot_dimension_numbers<[1], [0], [0], [1], [0, 0, 1, 1], [], []>} : vector<8x24xf32>, vector<24x128xf32>, vector<8x128xf32> -> vector<8x128xf32>
    %13 = vector.extract_strided_slice %12 {offsets = [0, 0], sizes = [8, 32], strides = [1, 1]} : vector<8x128xf32> to vector<8x32xf32>
    %cst_10 = arith.constant dense<0.000000e+00> : vector<32xf32>
    %14 = vector.multi_reduction <add>, %13, %cst_10 [0] : vector<8x32xf32> to vector<32xf32>
    %15 = vector.shape_cast %14 : vector<32xf32> to vector<1x32xf32>
    %cst_11 = arith.constant 1.250000e-01 : f32
    %16 = vector.broadcast %cst_11 : f32 to vector<1x32xf32>
    %17 = arith.mulf %15, %16 : vector<1x32xf32>
    %18 = vector.broadcast %17 : vector<1x32xf32> to vector<8x32xf32>
    %19 = arith.subf %13, %18 : vector<8x32xf32>
    %20 = arith.mulf %19, %19 : vector<8x32xf32>
    %cst_12 = arith.constant dense<0.000000e+00> : vector<32xf32>
    %21 = vector.multi_reduction <add>, %20, %cst_12 [0] : vector<8x32xf32> to vector<32xf32>
    %22 = vector.shape_cast %21 : vector<32xf32> to vector<1x32xf32>
    %cst_13 = arith.constant 1.250000e-01 : f32
    %23 = vector.broadcast %cst_13 : f32 to vector<1x32xf32>
    %24 = arith.mulf %22, %23 : vector<1x32xf32>
    %cst_14 = arith.constant 5.000000e-05 : f32
    %25 = vector.broadcast %cst_14 : f32 to vector<1x32xf32>
    %26 = arith.addf %24, %25 : vector<1x32xf32>
    %27 = math.rsqrt %26 : vector<1x32xf32>
    %28 = arith.mulf %7, %27 : vector<1x32xf32>
    %29 = vector.broadcast %28 : vector<1x32xf32> to vector<8x32xf32>
    %30 = arith.mulf %19, %29 : vector<8x32xf32>
    %31 = vector.broadcast %8 : vector<1x32xf32> to vector<8x32xf32>
    %32 = arith.addf %30, %31 : vector<8x32xf32>
    %33 = arith.addf %32, %1 : vector<8x32xf32>
    %cst_15 = arith.constant 0.000000e+00 : f32
    %34 = vector.broadcast %cst_15 : f32 to vector<8x32xf32>
    %35 = arith.cmpf oge, %33, %34 : vector<8x32xf32>
    %cst_16 = arith.constant 0.699999988 : f32
    %36 = vector.broadcast %cst_16 : f32 to vector<8x32xf32>
    %37 = arith.mulf %36, %33 : vector<8x32xf32>
    %38 = arith.select %35, %33, %37 : vector<8x32xi1>, vector<8x32xf32>
    %cst_17 = arith.constant dense<0.000000e+00> : vector<8x128xf32>
    %39 = tpu.matmul %38, %4, %cst_17 {dimension_numbers = #tpu.dot_dimension_numbers<[1], [0], [0], [1], [0, 0, 1, 1], [], []>} : vector<8x32xf32>, vector<32x128xf32>, vector<8x128xf32> -> vector<8x128xf32>
    %40 = vector.extract_strided_slice %39 {offsets = [0, 0], sizes = [8, 32], strides = [1, 1]} : vector<8x128xf32> to vector<8x32xf32>
    %cst_18 = arith.constant dense<0.000000e+00> : vector<32xf32>
    %41 = vector.multi_reduction <add>, %40, %cst_18 [0] : vector<8x32xf32> to vector<32xf32>
    %42 = vector.shape_cast %41 : vector<32xf32> to vector<1x32xf32>
    %cst_19 = arith.constant 1.250000e-01 : f32
    %43 = vector.broadcast %cst_19 : f32 to vector<1x32xf32>
    %44 = arith.mulf %42, %43 : vector<1x32xf32>
    %45 = vector.broadcast %44 : vector<1x32xf32> to vector<8x32xf32>
    %46 = arith.subf %40, %45 : vector<8x32xf32>
    %47 = arith.mulf %46, %46 : vector<8x32xf32>
    %cst_20 = arith.constant dense<0.000000e+00> : vector<32xf32>
    %48 = vector.multi_reduction <add>, %47, %cst_20 [0] : vector<8x32xf32> to vector<32xf32>
    %49 = vector.shape_cast %48 : vector<32xf32> to vector<1x32xf32>
    %cst_21 = arith.constant 1.250000e-01 : f32
    %50 = vector.broadcast %cst_21 : f32 to vector<1x32xf32>
    %51 = arith.mulf %49, %50 : vector<1x32xf32>
    %cst_22 = arith.constant 5.000000e-05 : f32
    %52 = vector.broadcast %cst_22 : f32 to vector<1x32xf32>
    %53 = arith.addf %51, %52 : vector<1x32xf32>
    %54 = math.rsqrt %53 : vector<1x32xf32>
    %55 = arith.mulf %9, %54 : vector<1x32xf32>
    %56 = vector.broadcast %55 : vector<1x32xf32> to vector<8x32xf32>
    %57 = arith.mulf %46, %56 : vector<8x32xf32>
    %58 = vector.broadcast %10 : vector<1x32xf32> to vector<8x32xf32>
    %59 = arith.addf %57, %58 : vector<8x32xf32>
    %60 = arith.addf %59, %2 : vector<8x32xf32>
    %cst_23 = arith.constant 0.000000e+00 : f32
    %61 = vector.broadcast %cst_23 : f32 to vector<8x32xf32>
    %62 = arith.cmpf oge, %60, %61 : vector<8x32xf32>
    %cst_24 = arith.constant 0.699999988 : f32
    %63 = vector.broadcast %cst_24 : f32 to vector<8x32xf32>
    %64 = arith.mulf %63, %60 : vector<8x32xf32>
    %65 = arith.select %62, %60, %64 : vector<8x32xi1>, vector<8x32xf32>
    %cst_25 = arith.constant dense<0.000000e+00> : vector<8x128xf32>
    %66 = tpu.matmul %65, %5, %cst_25 {dimension_numbers = #tpu.dot_dimension_numbers<[1], [0], [0], [1], [0, 0, 1, 1], [], []>} : vector<8x32xf32>, vector<32x128xf32>, vector<8x128xf32> -> vector<8x128xf32>
    %67 = vector.broadcast %11 : vector<1x128xf32> to vector<8x128xf32>
    %68 = arith.addf %66, %67 : vector<8x128xf32>
    %cst_26 = arith.constant 2.000000e+01 : f32
    %69 = vector.broadcast %cst_26 : f32 to vector<8x128xf32>
    %70 = arith.minimumf %68, %69 : vector<8x128xf32>
    %cst_27 = arith.constant 2.000000e+01 : f32
    %71 = vector.broadcast %cst_27 : f32 to vector<8x128xf32>
    %72 = arith.cmpf ogt, %68, %71 : vector<8x128xf32>
    %73 = math.exp %70 : vector<8x128xf32>
    %74 = math.log1p %73 : vector<8x128xf32>
    %75 = arith.select %72, %68, %74 : vector<8x128xi1>, vector<8x128xf32>
    %c0_28 = arith.constant 0 : index
    %c0_29 = arith.constant 0 : index
    %76 = vector.load %arg4[%c0_28, %c0_29] : memref<8x128xf32, #tpu.memory_space<vmem>>, vector<8x128xf32>
    tpu.vector_store %arg4[%c0_28, %c0_29], %75 {strides = array<i32>} : memref<8x128xf32, #tpu.memory_space<vmem>>, vector<8x128xf32>,
    return
  }
}

</mosaic_0001>

<bundles_post_ra>
// kernel: decoder_forward.1
= control target key start
LH: loop header
LB: loop body
LE: loop exit
PB: predicated region body
PF: predicated region fallthrough
CT: control target
= control target key end

     0   :  { %9 = vsyncpa [#allocation3], 0  ;;  %s731_s0 = inlined_call_operand.hbm [shape: f32[96,128], index: 0, kind: input, shape index: {}]   ;;  %s732_s1 = inlined_call_operand.hbm [shape: f32[8,24], index: 1, kind: input, shape index: {}]   ;;  %s733_s2 = inlined_call_operand.hbm [shape: f32[8,32], index: 2, kind: input, shape index: {}]   ;;  %s734_s3 = inlined_call_operand.hbm [shape: f32[8,32], index: 3, kind: input, shape index: {}]   ;;  %s735_s4 = inlined_call_operand.hbm [shape: f32[8,128], index: 4, kind: output, shape index: {}]  }
   0x1   :  { %10 = vsyncpa [#allocation6], 0 }
   0x2   :  { %11 = vsyncpa [#allocation9], 0 }
   0x3   :  { %12 = vsyncpa [#allocation4], 0  ;;  %s608_s15 = smov [#allocation5]   ;;  %s609_s17 = smov [#allocation2]  }
   0x4   :  { %s31_s16 = sshll.u32 %s608_s15, 4  ;;  %s18_s18 = sshll.u32 %s609_s17, 4  ;;  %s32_s16 = int_to_ptr.vmem [resolvable:$true] %s31_s16  ;;  %s643_s18 = int_to_ptr.vmem [resolvable:$true] %s18_s18 }
   0x5   :  { %s490_s21 = scalar_lea.hbm %s732_s1, 128 }
   0x6   :  { %p491_p0 = scmp.ne.s32.totalorder %s732_s1, %s490_s21  ;;  %p494_p1 = scmp.lt.u32.totalorder %s490_s21, %s732_s1 }
   0x8   :  { %p496_p2 = pnand %p494_p1, %p491_p0 }
   0xa   :  { %499 = shalt.err (!%p496_p2)
}
   0xb   :  { %s500_s26 = scalar_lea.vmem %s32_s16, 128  ;;  %p505_p4 = scmp.lt.s32.totalorder %s32_s16, %s32_s16 }
   0xc   :  { %p501_p3 = scmp.ne.s32.totalorder %s32_s16, %s500_s26  ;;  %p506_p5 = scmp.lt.s32.totalorder %s500_s26, %s500_s26 }
   0xe   :  { %p507_p6 = por %p506_p5, %p505_p4 }
  0x10   :  { %p508_p7 = pnand %p507_p6, %p501_p3 }
  0x12   :  { %511 = shalt.err (!%p508_p7)
}
  0x13   :  { %34 = dma.hbm_to_vmem [thread:$0]  %s732_s1, 128, %s32_s16, [#allocation6]  }
  0x14   :  { %s512_s5 = scalar_lea.hbm %s731_s0, 1536 }
  0x15   :  { %p513_p8 = scmp.ne.s32.totalorder %s731_s0, %s512_s5  ;;  %p516_p9 = scmp.lt.u32.totalorder %s512_s5, %s731_s0 }
  0x17   :  { %p518_p10 = pnand %p516_p9, %p513_p8 }
  0x19   :  { %521 = shalt.err (!%p518_p10)
}
  0x1a   :  { %s522_s10 = scalar_lea.vmem %s643_s18, 1536  ;;  %p527_p12 = scmp.lt.s32.totalorder %s643_s18, %s643_s18 }
  0x1b   :  { %p523_p11 = scmp.ne.s32.totalorder %s643_s18, %s522_s10  ;;  %p528_p13 = scmp.lt.s32.totalorder %s522_s10, %s522_s10 }
  0x1d   :  { %p529_p0 = por %p528_p13, %p527_p12 }
  0x1f   :  { %p530_p1 = pnand %p529_p0, %p523_p11 }
  0x21   :  { %533 = shalt.err (!%p530_p1)
}
  0x22   :  { %s610_s1 = smov 128   ;;  %s611_s11 = smov 8  }
  0x23   :  { %24 = dma.hbm_to_vmem [thread:$0]  %s731_s0, 1536, %s643_s18, [#allocation3], %s610_s1, %s610_s1, %s611_s11  }
  0x24   :  { %s612_s14 = smov [#allocation7]   ;;  %s613_s16 = smov [#allocation8]  }
  0x25   :  { %s41_s15 = sshll.u32 %s612_s14, 4  ;;  %s51_s17 = sshll.u32 %s613_s16, 4  ;;  %s42_s15 = int_to_ptr.vmem [resolvable:$true] %s41_s15  ;;  %s52_s17 = int_to_ptr.vmem [resolvable:$true] %s51_s17 }
  0x26   :  { %s534_s21 = scalar_lea.hbm %s733_s2, 128 }
  0x27   :  { %p535_p2 = scmp.ne.s32.totalorder %s733_s2, %s534_s21  ;;  %p538_p3 = scmp.lt.u32.totalorder %s534_s21, %s733_s2 }
  0x29   :  { %p540_p4 = pnand %p538_p3, %p535_p2 }
  0x2b   :  { %543 = shalt.err (!%p540_p4)
}
  0x2c   :  { %s544_s0 = scalar_lea.vmem %s42_s15, 128  ;;  %p549_p6 = scmp.lt.s32.totalorder %s42_s15, %s42_s15 }
  0x2d   :  { %p545_p5 = scmp.ne.s32.totalorder %s42_s15, %s544_s0  ;;  %p550_p7 = scmp.lt.s32.totalorder %s544_s0, %s544_s0 }
  0x2f   :  { %p551_p8 = por %p550_p7, %p549_p6 }
  0x31   :  { %p552_p9 = pnand %p551_p8, %p545_p5 }
  0x33   :  { %555 = shalt.err (!%p552_p9)
}
  0x34   :  { %44 = dma.hbm_to_vmem [thread:$0]  %s733_s2, 128, %s42_s15, [#allocation6]  }
  0x35   :  { %s556_s29 = scalar_lea.hbm %s734_s3, 128 }
  0x36   :  { %p557_p10 = scmp.ne.s32.totalorder %s734_s3, %s556_s29  ;;  %p560_p11 = scmp.lt.u32.totalorder %s556_s29, %s734_s3 }
  0x38   :  { %p562_p12 = pnand %p560_p11, %p557_p10 }
  0x3a   :  { %565 = shalt.err (!%p562_p12)
}
  0x3b   :  { %s566_s8 = scalar_lea.vmem %s52_s17, 128  ;;  %p571_p0 = scmp.lt.s32.totalorder %s52_s17, %s52_s17 }
  0x3c   :  { %p567_p13 = scmp.ne.s32.totalorder %s52_s17, %s566_s8  ;;  %p572_p1 = scmp.lt.s32.totalorder %s566_s8, %s566_s8 }
  0x3e   :  { %p573_p2 = por %p572_p1, %p571_p0 }
  0x40   :  { %p574_p3 = pnand %p573_p2, %p567_p13 }
  0x42   :  { %577 = shalt.err (!%p574_p3)
}
  0x43   :  { %54 = dma.hbm_to_vmem [thread:$0]  %s734_s3, 128, %s52_s17, [#allocation9]  }
  0x44   :  { %600 = dma.done.wait [#allocation3], 1536  }
  0x45   :  { %601 = vsyncadd [#allocation3], 4294965760 }
  0x46   :  { %602 = dma.done.wait [#allocation6], 256  }
  0x47   :  { %603 = vsyncadd [#allocation6], 4294967040 }
  0x48   :  { %604 = dma.done.wait [#allocation9], 128  }
  0x49   :  { %605 = vsyncadd [#allocation9], 4294967168  ;;  %v614_v0 = vmov 0.0|0.0   ;;  %vm615_vm0 = vmmov 0   ;;  %v616_v1 = vmov 0.0   ;;  %v70_v2 = vld [vmem:[#allocation2] sm:$0xff]  ;;  %v178_v34 = vlaneseq }
  0x4a   :  { %457 = vmatprep.subr.bf16.mxu0 %v614_v0  ;;  %432 = vmatprep.mubr.msk.f32.mxu0 %vm615_vm0, %v616_v1  ;;  %v71_v3 = vld [vmem:[#allocation2 + $0x8] sm:$0xff]  ;;  %v72_v5 = vld [vmem:[#allocation2 + $0x10] sm:$0xff]  ;;  %v67_v6 = vld [vmem:[#allocation5] sm:$0xff]  ;;  %vm82_vm1 = vcmask 195584   ;;  %vm156_vm2 = vcmask 261120   ;;  %s617_s3 = smov [#allocation10]  }
  0x4b   :  { %460 = vmatprep.subr.bf16.mxu1 %v614_v0  ;;  %443 = vmatprep.mubr.msk.f32.mxu1 %vm615_vm0, %v616_v1  ;;  %v458_v4 = vpack.c.bf16 %v71_v3, %v70_v2  ;;  %v73_v7 = vld [vmem:[#allocation2 + $0x18] sm:$0xff]  ;;  %v74_v8 = vld [vmem:[#allocation2 + $0x20] sm:$0xff]  ;;  %v75_v10 = vld [vmem:[#allocation2 + $0x28] sm:$0xff]  ;;  %v707_v35 = vshrl.u32 %v178_v34, 7  ;;  %s398_s10 = sshll.u32 %s617_s3, 4  ;;  %s399_s10 = int_to_ptr.vmem [resolvable:$true] %s398_s10 }
  0x4c   :  { %v461_v9 = vpack.c.bf16 %v74_v8, %v73_v7  ;;  %v76_v11 = vld [vmem:[#allocation2 + $0x30] sm:$0xff]  ;;  %v81_v36 = vld [vmem:[#allocation2 + $0x58] sm:$0xff]  ;;  %v68_v44 = vld [vmem:[#allocation7] sm:$0xff]  ;;  %s578_s1 = scalar_lea.vmem %s399_s10, 128  ;;  %p583_p5 = scmp.lt.s32.totalorder %s399_s10, %s399_s10 }
  0x4d   :  { %459 = vmatpush3.bf16.msra.mxu0 %v458_v4  ;;  %v464_v12 = vpack.c.bf16 %v76_v11, %v75_v10  ;;  %v180_v37 = vsub.s32 0, %v707_v35  ;;  %v185_v38 = vsub.s32 1, %v707_v35  ;;  %v77_v49 = vld [vmem:[#allocation2 + $0x38] sm:$0xff]  ;;  %v78_v50 = vld [vmem:[#allocation2 + $0x40] sm:$0xff]  ;;  %v79_v52 = vld [vmem:[#allocation2 + $0x48] sm:$0xff]  ;;  %p579_p4 = scmp.ne.s32.totalorder %s399_s10, %s578_s1  ;;  %p584_p6 = scmp.lt.s32.totalorder %s578_s1, %s578_s1 }
  0x4e   :  { %430 = vmatprep.subr.mxu0 %v616_v1  ;;  %462 = vmatpush3.bf16.msra.mxu1 %v461_v9  ;;  %v467_v51 = vpack.c.bf16 %v78_v50, %v77_v49  ;;  %v80_v53 = vld [vmem:[#allocation2 + $0x50] sm:$0xff] }
  0x4f   :  { %463 = vmatprep.subr.bf16.mxu1 %v614_v0  ;;  %v186_v42 = vrot.slane %v81_v36, %v185_v38  ;;  %v470_v54 = vpack.c.bf16 %v80_v53, %v79_v52  ;;  %p585_p7 = por %p584_p6, %p583_p5 }
  0x51   :  { %431 = vmatpush3.msra.mxu0 %v72_v5  ;;  %p586_p8 = pnand %p585_p7, %p579_p4 }
  0x52   :  { %433 = vmatmul.mubr.msk.f32.vlgmr.msra.gmra.mrb[0].mxu0 %vm82_vm1, %v67_v6  ;;  %466 = vmatprep.subr.bf16.mxu0 %v614_v0 }
  0x53   :  { %454 = vmatprep.mubr.msk.f32.mxu0 %vm615_vm0, %v616_v1  ;;  %465 = vmatpush3.bf16.msra.mxu1 %v464_v12  ;;  %v288_v12 = vsub.s32 2, %v707_v35 }
  0x54   :  { %468 = vmatpush3.bf16.msra.mxu0 %v467_v51 }
  0x55   :  { %469 = vmatprep.subr.bf16.mxu0 %v614_v0 }
  0x58   :  { %471 = vmatpush3.bf16.msra.mxu0 %v470_v54 }
 0x125   :  { %v152_v13 = vpop.f32.mrb[0].mxu0 }
 0x126   :  { %v157_v14 = vsel %vm156_vm2, %v152_v13, 0.0  ;;  %v434_v15 = vpop.f32.mrb[1].mxu0 }
 0x127   :  { %v158_v16 = vrot.slane %v157_v14, 4 }
 0x129   :  { %v159_v17 = vadd.f32 %v158_v16, %v157_v14 }
 0x12b   :  { %v160_v18 = vrot.slane %v159_v17, 2 }
 0x12d   :  { %v161_v19 = vadd.f32 %v160_v18, %v159_v17 }
 0x12f   :  { %v162_v20 = vrot.slane %v161_v19, 1 }
 0x131   :  { %v163_v21 = vadd.f32 %v162_v20, %v161_v19  ;;  %v69_v19 = vld [vmem:[#allocation8] sm:$0xff] }
 0x133   :  { %v164_v22 = vmul.f32 0.125, %v163_v21 }
 0x135   :  { %v165_v23 = vsub.f32 %v152_v13, %v164_v22  ;;  %v293_v13 = vsub.s32 3, %v707_v35 }
 0x137   :  { %v166_v24 = vmul.f32 %v165_v23, %v165_v23  ;;  %v294_v17 = vrot.slane %v81_v36, %v293_v13 }
 0x139   :  { %v167_v25 = vsel %vm156_vm2, %v166_v24, 0.0  ;;  %v302_v24 = vsub.s32 4, %v707_v35 }
 0x13a   :  { %v168_v26 = vrot.slane %v167_v25, 4 }
 0x13c   :  { %v169_v27 = vadd.f32 %v168_v26, %v167_v25  ;;  %v303_v25 = vrot.slane %v81_v36, %v302_v24 }
 0x13e   :  { %v170_v28 = vrot.slane %v169_v27, 2 }
 0x140   :  { %v171_v29 = vadd.f32 %v170_v28, %v169_v27 }
 0x142   :  { %v172_v30 = vrot.slane %v171_v29, 1 }
 0x144   :  { %v173_v31 = vadd.f32 %v172_v30, %v171_v29 }
 0x146   :  { %v174_v32 = vmul.f32 0.125, %v173_v31 }
 0x148   :  { %v175_v33 = vadd.f32 5e-05, %v174_v32 }
 0x14a   :  { %482 = vrsqrt.f32 %v175_v33 }
 0x154   :  { %v483_v39 = vpop.eup %482 }
 0x155   :  { %v177_v40 = vmul.f32 %v483_v39, %v81_v36 }
 0x157   :  { %v181_v41 = vrot.slane %v177_v40, %v180_v37 }
 0x159   :  { %v182_v43 = vmul.f32 %v181_v41, %v165_v23 }
 0x15b   :  { %v187_v45 = vadd.f32 %v186_v42, %v182_v43 }
 0x15d   :  { %v188_v46 = vadd.f32 %v187_v45, %v68_v44 }
 0x15f   :  { %vm189_vm3 = vcmp.ge.f32.partialorder %v188_v46, 0.0  ;;  %v190_v47 = vmul.f32 0.7, %v188_v46 }
 0x161   :  { %v191_v48 = vsel %vm189_vm3, %v188_v46, %v190_v47 }
 0x162   :  { %444 = vmatmul.mubr.msk.f32.vlgmr.msra.gmra.mrb[0].mxu1 %vm156_vm2, %v191_v48 }
 0x235   :  { %v261_v55 = vpop.f32.mrb[0].mxu1 }
 0x236   :  { %v265_v56 = vsel %vm156_vm2, %v261_v55, 0.0  ;;  %v445_v57 = vpop.f32.mrb[1].mxu1 }
 0x237   :  { %v266_v58 = vrot.slane %v265_v56, 4 }
 0x239   :  { %v267_v59 = vadd.f32 %v266_v58, %v265_v56 }
 0x23b   :  { %v268_v60 = vrot.slane %v267_v59, 2 }
 0x23d   :  { %v269_v61 = vadd.f32 %v268_v60, %v267_v59 }
 0x23f   :  { %v270_v62 = vrot.slane %v269_v61, 1 }
 0x241   :  { %v271_v63 = vadd.f32 %v270_v62, %v269_v61 }
 0x243   :  { %v272_v1 = vmul.f32 0.125, %v271_v63 }
 0x245   :  { %v273_v2 = vsub.f32 %v261_v55, %v272_v1 }
 0x247   :  { %v274_v3 = vmul.f32 %v273_v2, %v273_v2 }
 0x249   :  { %v275_v4 = vsel %vm156_vm2, %v274_v3, 0.0 }
 0x24a   :  { %v276_v0 = vrot.slane %v275_v4, 4 }
 0x24c   :  { %v277_v5 = vadd.f32 %v276_v0, %v275_v4 }
 0x24e   :  { %v278_v6 = vrot.slane %v277_v5, 2 }
 0x250   :  { %v279_v7 = vadd.f32 %v278_v6, %v277_v5 }
 0x252   :  { %v280_v8 = vrot.slane %v279_v7, 1 }
 0x254   :  { %v281_v9 = vadd.f32 %v280_v8, %v279_v7 }
 0x256   :  { %v282_v10 = vmul.f32 0.125, %v281_v9 }
 0x258   :  { %v283_v11 = vadd.f32 5e-05, %v282_v10 }
 0x25a   :  { %484 = vrsqrt.f32 %v283_v11 }
 0x264   :  { %v485_v14 = vpop.eup %484 }
 0x265   :  { %v285_v15 = vmul.f32 %v485_v14, %v81_v36 }
 0x267   :  { %v289_v16 = vrot.slane %v285_v15, %v288_v12 }
 0x269   :  { %v290_v18 = vmul.f32 %v289_v16, %v273_v2 }
 0x26b   :  { %v295_v20 = vadd.f32 %v294_v17, %v290_v18 }
 0x26d   :  { %v296_v21 = vadd.f32 %v295_v20, %v69_v19 }
 0x26f   :  { %vm297_vm4 = vcmp.ge.f32.partialorder %v296_v21, 0.0  ;;  %v298_v22 = vmul.f32 0.7, %v296_v21 }
 0x271   :  { %v299_v23 = vsel %vm297_vm4, %v296_v21, %v298_v22 }
 0x272   :  { %455 = vmatmul.mubr.msk.f32.vlgmr.msra.gmra.mrb[2].mxu0 %vm156_vm2, %v299_v23 }
 0x345   :  { %v373_v26 = vpop.f32.mrb[2].mxu0 }
 0x346   :  { %v374_v27 = vadd.f32 %v373_v26, %v303_v25  ;;  %v456_v28 = vpop.f32.mrb[3].mxu0 }
 0x348   :  { %v377_v29 = vmin.f32 %v374_v27, 20.0  ;;  %vm378_vm6 = vcmp.gt.f32.partialorder %v374_v27, 20.0 }
 0x34a   :  { %v379_v30 = vmul.f32 1.442695, %v377_v29 }
 0x34c   :  { %486 = vpow2.f32 %v379_v30 }
 0x356   :  { %v487_v31 = vpop.eup %486 }
 0x357   :  { %v381_v32 = vadd.f32 1.0, %v487_v31  ;;  %v384_v33 = vmul.f32 -0.5, %v487_v31  ;;  %v387_v37 = vand.u32 2147483647, %v487_v31 }
 0x359   :  { %488 = vlog2.f32 %v381_v32  ;;  %v385_v34 = vadd.f32 1.0, %v384_v33  ;;  %vm388_vm5 = vcmp.lt.f32.partialorder %v387_v37, 0.0004427343 }
 0x35b   :  { %v386_v40 = vmul.f32 %v487_v31, %v385_v34 }
 0x363   :  { %v489_v38 = vpop.eup %488 }
 0x364   :  { %v383_v39 = vmul.f32 0.6931472, %v489_v38 }
 0x366   :  { %v389_v35 = vsel %vm388_vm5, %v386_v40, %v383_v39 }
 0x367   :  { %v390_v36 = vsel %vm378_vm6, %v374_v27, %v389_v35 }
 0x368   :  { %391 = vst [vmem:[#allocation10] sm:$0xff] %v390_v36 }
 0x369   :  { %589 = shalt.err (!%p586_p8)
}
 0x36a   :  { %s590_s13 = scalar_lea.hbm %s735_s4, 128 }
 0x36b   :  { %p591_p9 = scmp.ne.s32.totalorder %s735_s4, %s590_s13  ;;  %p594_p10 = scmp.lt.u32.totalorder %s590_s13, %s735_s4 }
 0x36d   :  { %p596_p11 = pnand %p594_p10, %p591_p9 }
 0x36f   :  { %599 = shalt.err (!%p596_p11)
}
 0x370   :  { %401 = dma.vmem_to_hbm [thread:$0]  %s399_s10, 128, %s735_s4, [#allocation4]  }
 0x371   :  { %606 = dma.done.wait [#allocation4], 128  }
 0x372   :  { %607 = vsyncadd [#allocation4], 4294967168 }
 0x373   :  { %405 = vsyncpa [#allocation3], 1 }
 0x374   :  { %406 = vsyncpa [#allocation6], 1 }
 0x375   :  { %407 = vsyncpa [#allocation9], 1 }
 0x376   :  { %408 = vsyncpa [#allocation4], 1 }

</bundles_post_ra>
